<compile_context>
chip_gen: v7x
topology: tpu7x:2x2x1
jax: 0.10.0
libtpu: 0.0.40
codegen_flags: <defaults>
</compile_context>

<pallas_src>
import jax
import jax.numpy as jnp
from jax.experimental import pallas as pl
from jax.experimental.pallas import tpu as pltpu

# Module hyperparameters (dim_input / dim_output are free symbols in the
# PyTorch source; pick small deterministic values).
DIM_INPUT = 16
HIDDEN = 32
DIM_OUTPUT = 8
NEG_SLOPE = 0.01  # nn.functional.leaky_relu default


def _leaky_relu(x):
    return jnp.where(x > 0, x, NEG_SLOPE * x)


def _round_up(n, m):
    return (n + m - 1) // m * m


def mlp_kernel(xT_ref, w1_ref, b1_ref, w2_ref, b2_ref, w3_ref, b3_ref, o_ref):
    # All activations carry the batch tile on the lane axis (last dim = tb).
    x = xT_ref[...]                                                    # (DIM_INPUT, tb) bf16
    h = jnp.dot(w1_ref[...], x, preferred_element_type=jnp.float32)    # (HIDDEN, tb) f32
    h = _leaky_relu(h + b1_ref[...])
    h = jnp.dot(w2_ref[...], h.astype(jnp.bfloat16),
                preferred_element_type=jnp.float32)                    # (HIDDEN, tb) f32
    h = _leaky_relu(h + b2_ref[...])
    o = jnp.dot(w3_ref[...], h.astype(jnp.bfloat16),
                preferred_element_type=jnp.float32)                    # (DIM_OUTPUT, tb) f32
    o_ref[...] = (o + b3_ref[...]).astype(o_ref.dtype)


def mlp_forward(x, params, *, batch_tile=4096):
    """x: (B, DIM_INPUT) float32 -> (B, DIM_OUTPUT) float32.

    Internally runs batch-on-lane: xT is (DIM_INPUT, Bp) bf16 and the output
    is (DIM_OUTPUT, Bp) f32, with Bp = B rounded up to the batch tile.  The
    tile is a multiple of 128 lanes; even at tb=4096 the double-buffered
    x/out tiles plus resident weights stay far under the scoped-VMEM default
    on every chip (v5e/v6e/v7x).  Multiple grid steps over batch tiles give
    software pipelining and, on v7x, shard across both TensorCores via
    dimension_semantics=("parallel",).
    """
    w1, b1, w2, b2, w3, b3 = params
    B = x.shape[0]

    # Lane-dense batch tile: multiple of 128, never bigger than needed.
    tb = max(128, min(_round_up(batch_tile, 128), _round_up(B, 128)))
    Bp = _round_up(B, tb)
    grid = (Bp // tb,)

    # Transpose so batch sits on the lane axis, zero-pad to the tile, and cast
    # to bf16 (halves HBM bytes; MXU runs bf16 at full rate).  XLA fuses the
    # pad + transpose + convert into a single producer fusion.
    xT = jnp.zeros((DIM_INPUT, Bp), jnp.bfloat16).at[:, :B].set(
        x.T.astype(jnp.bfloat16))

    # Weights/biases are tiny; constant index_map keeps them resident in VMEM
    # across all batch tiles (no re-DMA per grid step).
    full = lambda arr: pl.BlockSpec(arr.shape, lambda i: (0, 0))

    outT = pl.pallas_call(
        mlp_kernel,
        out_shape=jax.ShapeDtypeStruct((DIM_OUTPUT, Bp), jnp.float32),
        grid_spec=pltpu.PrefetchScalarGridSpec(
            num_scalar_prefetch=0,
            grid=grid,
            in_specs=[
                pl.BlockSpec((DIM_INPUT, tb), lambda i: (0, i)),   # x tile
                full(w1), full(b1),
                full(w2), full(b2),
                full(w3), full(b3),
            ],
            out_specs=pl.BlockSpec((DIM_OUTPUT, tb), lambda i: (0, i)),
        ),
        compiler_params=pltpu.CompilerParams(
            dimension_semantics=("parallel",),   # megacore-shards batch tiles on v7x
        ),
    )(xT, w1, b1, w2, b2, w3, b3)

    # Back to the caller-facing (B, DIM_OUTPUT) layout (free layout plumbing).
    return outT[:, :B].T


def init_params(key):
    """nn.Linear-shaped params: weights (out, in) in bf16, biases (out, 1) f32."""
    k1, k2, k3, k4, k5, k6 = jax.random.split(key, 6)
    w1 = (jax.random.normal(k1, (HIDDEN, DIM_INPUT), jnp.float32) * 0.1).astype(jnp.bfloat16)
    b1 = jax.random.normal(k2, (HIDDEN, 1), jnp.float32) * 0.1
    w2 = (jax.random.normal(k3, (HIDDEN, HIDDEN), jnp.float32) * 0.1).astype(jnp.bfloat16)
    b2 = jax.random.normal(k4, (HIDDEN, 1), jnp.float32) * 0.1
    w3 = (jax.random.normal(k5, (DIM_OUTPUT, HIDDEN), jnp.float32) * 0.1).astype(jnp.bfloat16)
    b3 = jax.random.normal(k6, (DIM_OUTPUT, 1), jnp.float32) * 0.1
    return (w1, b1, w2, b2, w3, b3)


def mlp_ref(x, params):
    """Pure-JAX reference of MyModel.forward with the same dtype pattern."""
    w1, b1, w2, b2, w3, b3 = params
    xT = x.T.astype(jnp.bfloat16)
    h = jnp.dot(w1, xT, preferred_element_type=jnp.float32) + b1
    h = _leaky_relu(h)
    h = jnp.dot(w2, h.astype(jnp.bfloat16), preferred_element_type=jnp.float32) + b2
    h = _leaky_relu(h)
    o = jnp.dot(w3, h.astype(jnp.bfloat16), preferred_element_type=jnp.float32) + b3
    return o.T


if __name__ == "__main__":
    key = jax.random.PRNGKey(0)
    kx, kp = jax.random.split(key)
    params = init_params(kp)

    # Small test that still exercises the multi-tile path: B=500 pads to 512
    # and runs a 4-step grid with tb=128 (tests index_map, padding, slicing).
    B = 500
    x = jax.random.normal(kx, (B, DIM_INPUT), jnp.float32)

    out = jax.block_until_ready(mlp_forward(x, params, batch_tile=128))
    ref = mlp_ref(x, params)
    assert out.shape == (B, DIM_OUTPUT)
    max_err = float(jnp.max(jnp.abs(out - ref)))
    assert jnp.allclose(out, ref, atol=1e-3, rtol=1e-3), f"max_err={max_err}"

    # Single-tile path with the default (large) batch tile: B < 128 pads to 128.
    B2 = 64
    x2 = jax.random.normal(kx, (B2, DIM_INPUT), jnp.float32)
    out2 = jax.block_until_ready(mlp_forward(x2, params))
    ref2 = mlp_ref(x2, params)
    assert out2.shape == (B2, DIM_OUTPUT)
    assert jnp.allclose(out2, ref2, atol=1e-3, rtol=1e-3)

    print("KERNEL_OK")
</pallas_src>

<mosaic_0001>
module attributes {stable_mosaic.version = 11 : i64} {
  func.func @mlp_kernel(%arg0: i32, %arg1: memref<16x128xbf16, #tpu.memory_space<vmem>>, %arg2: memref<32x16xbf16, #tpu.memory_space<vmem>>, %arg3: memref<32x1xf32, #tpu.memory_space<vmem>>, %arg4: memref<32x32xbf16, #tpu.memory_space<vmem>>, %arg5: memref<32x1xf32, #tpu.memory_space<vmem>>, %arg6: memref<8x32xbf16, #tpu.memory_space<vmem>>, %arg7: memref<8x1xf32, #tpu.memory_space<vmem>>, %arg8: memref<8x128xf32, #tpu.memory_space<vmem>>) attributes {dimension_semantics = [#tpu.dimension_semantics<parallel>], iteration_bounds = array<i64: 4>, scalar_prefetch = 0 : i64, scratch_operands = 0 : i64, tpu.core_type = #tpu.core_type<tc>, window_params = [{transform_indices = @transform_0, window_bounds = array<i64: 16, 128>}, {pipeline_mode = #tpu.pipeline_mode<synchronous>, transform_indices = @transform_1, window_bounds = array<i64: 32, 16>}, {pipeline_mode = #tpu.pipeline_mode<synchronous>, transform_indices = @transform_2, window_bounds = array<i64: 32, 1>}, {pipeline_mode = #tpu.pipeline_mode<synchronous>, transform_indices = @transform_3, window_bounds = array<i64: 32, 32>}, {pipeline_mode = #tpu.pipeline_mode<synchronous>, transform_indices = @transform_4, window_bounds = array<i64: 32, 1>}, {pipeline_mode = #tpu.pipeline_mode<synchronous>, transform_indices = @transform_5, window_bounds = array<i64: 8, 32>}, {pipeline_mode = #tpu.pipeline_mode<synchronous>, transform_indices = @transform_6, window_bounds = array<i64: 8, 1>}, {transform_indices = @transform_7, window_bounds = array<i64: 8, 128>}]} {
    %c0 = arith.constant 0 : index
    %c0_0 = arith.constant 0 : index
    %0 = vector.load %arg1[%c0, %c0_0] : memref<16x128xbf16, #tpu.memory_space<vmem>>, vector<16x128xbf16>
    %c0_1 = arith.constant 0 : index
    %c0_2 = arith.constant 0 : index
    %1 = vector.load %arg2[%c0_1, %c0_2] : memref<32x16xbf16, #tpu.memory_space<vmem>>, vector<32x16xbf16>
    %cst = arith.constant dense<0.000000e+00> : vector<32x128xf32>
    %2 = tpu.matmul %1, %0, %cst {dimension_numbers = #tpu.dot_dimension_numbers<[1], [0], [0], [1], [0, 0, 1, 1], [], []>} : vector<32x16xbf16>, vector<16x128xbf16>, vector<32x128xf32> -> vector<32x128xf32>
    %c0_3 = arith.constant 0 : index
    %c0_4 = arith.constant 0 : index
    %3 = vector.load %arg3[%c0_3, %c0_4] : memref<32x1xf32, #tpu.memory_space<vmem>>, vector<32x1xf32>
    %4 = vector.broadcast %3 : vector<32x1xf32> to vector<32x128xf32>
    %5 = arith.addf %2, %4 : vector<32x128xf32>
    %cst_5 = arith.constant 0.000000e+00 : f32
    %6 = vector.broadcast %cst_5 : f32 to vector<32x128xf32>
    %7 = arith.cmpf ogt, %5, %6 : vector<32x128xf32>
    %cst_6 = arith.constant 0.00999999977 : f32
    %8 = vector.broadcast %cst_6 : f32 to vector<32x128xf32>
    %9 = arith.mulf %8, %5 : vector<32x128xf32>
    %10 = arith.select %7, %5, %9 : vector<32x128xi1>, vector<32x128xf32>
    %c0_7 = arith.constant 0 : index
    %c0_8 = arith.constant 0 : index
    %11 = vector.load %arg4[%c0_7, %c0_8] : memref<32x32xbf16, #tpu.memory_space<vmem>>, vector<32x32xbf16>
    %12 = arith.truncf %10 : vector<32x128xf32> to vector<32x128xbf16>
    %cst_9 = arith.constant dense<0.000000e+00> : vector<32x128xf32>
    %13 = tpu.matmul %11, %12, %cst_9 {dimension_numbers = #tpu.dot_dimension_numbers<[1], [0], [0], [1], [0, 0, 1, 1], [], []>} : vector<32x32xbf16>, vector<32x128xbf16>, vector<32x128xf32> -> vector<32x128xf32>
    %c0_10 = arith.constant 0 : index
    %c0_11 = arith.constant 0 : index
    %14 = vector.load %arg5[%c0_10, %c0_11] : memref<32x1xf32, #tpu.memory_space<vmem>>, vector<32x1xf32>
    %15 = vector.broadcast %14 : vector<32x1xf32> to vector<32x128xf32>
    %16 = arith.addf %13, %15 : vector<32x128xf32>
    %cst_12 = arith.constant 0.000000e+00 : f32
    %17 = vector.broadcast %cst_12 : f32 to vector<32x128xf32>
    %18 = arith.cmpf ogt, %16, %17 : vector<32x128xf32>
    %cst_13 = arith.constant 0.00999999977 : f32
    %19 = vector.broadcast %cst_13 : f32 to vector<32x128xf32>
    %20 = arith.mulf %19, %16 : vector<32x128xf32>
    %21 = arith.select %18, %16, %20 : vector<32x128xi1>, vector<32x128xf32>
    %c0_14 = arith.constant 0 : index
    %c0_15 = arith.constant 0 : index
    %22 = vector.load %arg6[%c0_14, %c0_15] : memref<8x32xbf16, #tpu.memory_space<vmem>>, vector<8x32xbf16>
    %23 = arith.truncf %21 : vector<32x128xf32> to vector<32x128xbf16>
    %cst_16 = arith.constant dense<0.000000e+00> : vector<8x128xf32>
    %24 = tpu.matmul %22, %23, %cst_16 {dimension_numbers = #tpu.dot_dimension_numbers<[1], [0], [0], [1], [0, 0, 1, 1], [], []>} : vector<8x32xbf16>, vector<32x128xbf16>, vector<8x128xf32> -> vector<8x128xf32>
    %c0_17 = arith.constant 0 : index
    %c0_18 = arith.constant 0 : index
    %25 = vector.load %arg7[%c0_17, %c0_18] : memref<8x1xf32, #tpu.memory_space<vmem>>, vector<8x1xf32>
    %26 = vector.broadcast %25 : vector<8x1xf32> to vector<8x128xf32>
    %27 = arith.addf %24, %26 : vector<8x128xf32>
    %c0_19 = arith.constant 0 : index
    %c0_20 = arith.constant 0 : index
    %28 = vector.load %arg8[%c0_19, %c0_20] : memref<8x128xf32, #tpu.memory_space<vmem>>, vector<8x128xf32>
    tpu.vector_store %arg8[%c0_19, %c0_20], %27 {strides = array<i32>} : memref<8x128xf32, #tpu.memory_space<vmem>>, vector<8x128xf32>,
    return
  }
  func.func @transform_0(%arg0: i32) -> (i32, i32) {
    %c0_i32 = arith.constant 0 : i32
    %c0_i32_0 = arith.constant 0 : i32
    return %c0_i32, %arg0 : i32, i32
  }
  func.func @transform_1(%arg0: i32) -> (i32, i32) {
    %c0_i32 = arith.constant 0 : i32
    %c0_i32_0 = arith.constant 0 : i32
    %c0_i32_1 = arith.constant 0 : i32
    return %c0_i32, %c0_i32_0 : i32, i32
  }
  func.func @transform_2(%arg0: i32) -> (i32, i32) {
    %c0_i32 = arith.constant 0 : i32
    %c0_i32_0 = arith.constant 0 : i32
    %c0_i32_1 = arith.constant 0 : i32
    return %c0_i32, %c0_i32_0 : i32, i32
  }
  func.func @transform_3(%arg0: i32) -> (i32, i32) {
    %c0_i32 = arith.constant 0 : i32
    %c0_i32_0 = arith.constant 0 : i32
    %c0_i32_1 = arith.constant 0 : i32
    return %c0_i32, %c0_i32_0 : i32, i32
  }
  func.func @transform_4(%arg0: i32) -> (i32, i32) {
    %c0_i32 = arith.constant 0 : i32
    %c0_i32_0 = arith.constant 0 : i32
    %c0_i32_1 = arith.constant 0 : i32
    return %c0_i32, %c0_i32_0 : i32, i32
  }
  func.func @transform_5(%arg0: i32) -> (i32, i32) {
    %c0_i32 = arith.constant 0 : i32
    %c0_i32_0 = arith.constant 0 : i32
    %c0_i32_1 = arith.constant 0 : i32
    return %c0_i32, %c0_i32_0 : i32, i32
  }
  func.func @transform_6(%arg0: i32) -> (i32, i32) {
    %c0_i32 = arith.constant 0 : i32
    %c0_i32_0 = arith.constant 0 : i32
    %c0_i32_1 = arith.constant 0 : i32
    return %c0_i32, %c0_i32_0 : i32, i32
  }
  func.func @transform_7(%arg0: i32) -> (i32, i32) {
    %c0_i32 = arith.constant 0 : i32
    %c0_i32_0 = arith.constant 0 : i32
    return %c0_i32, %arg0 : i32, i32
  }
}

</mosaic_0001>

<bundles_post_ra>
// kernel: tpu_custom_call.1
= control target key start
LH: loop header
LB: loop body
LE: loop exit
PB: predicated region body
PF: predicated region fallthrough
CT: control target
= control target key end

     0   :  { %12 = vsyncpa [#allocation4], 0  ;;  %s1045_s0 = inlined_call_operand.vmem [shape: bf16[16,512], index: 0, kind: input, shape index: {}]   ;;  %s1046_s1 = inlined_call_operand.vmem [shape: bf16[32,16], index: 1, kind: input, shape index: {}]   ;;  %s1047_s2 = inlined_call_operand.vmem [shape: f32[32,1], index: 2, kind: input, shape index: {}]   ;;  %s1048_s3 = inlined_call_operand.vmem [shape: bf16[32,32], index: 3, kind: input, shape index: {}]   ;;  %s1049_s4 = inlined_call_operand.vmem [shape: f32[32,1], index: 4, kind: input, shape index: {}]   ;;  %s1050_s5 = inlined_call_operand.vmem [shape: bf16[8,32], index: 5, kind: input, shape index: {}]   ;;  %s1051_s6 = inlined_call_operand.vmem [shape: f32[8,1], index: 6, kind: input, shape index: {}]   ;;  %s1052_s7 = inlined_call_operand.hbm [shape: f32[8,512], index: 7, kind: output, shape index: {}]  }
   0x1   :  { %14 = vsyncpa [#allocation4 + $0x1], 0  ;;  %s888_s24 = smov 0   ;;  %s890_s25 = smov 0  }
   0x2   :  { %s892_s26 = smov 0   ;;  %s894_s27 = smov 0  }
   0x3 LB: > { %s676_s28 = sadd.s32 4294967295, %s842_s27   ;;  %s677_s29 = sadd.s32 4294967294, %s842_s27   ;;  %s842_s27 = sphi %s894_s27, %s1058_s27   ;;  %s838_s26 = sphi %s892_s26, %s1057_s26   ;;  %s834_s25 = sphi %s890_s25, %s1056_s25   ;;  %s830_s24 = sphi %s888_s24, %s1055_s24  }
   0x4   : > { %s911_s30 = sadd.s32 1, %s842_s27   ;;  %s27_s8 = sadd.s32 1, %s838_s26 }
   0x5   : > { %s24_s9 = ssub.s32 %s842_s27, %s911_s30  ;;  %p34_p0 = scmp.ne.s32.totalorder %s838_s26, %s834_s25 }
   0x6   : > { %p25_p1 = scmp.eq.s32.totalorder %s24_s9, 0  ;;  %p35_p2 = scmp.eq.s32.totalorder %s842_s27, 0 }
   0x7   : > { %p190_p3 = scmp.eq.s32.totalorder %s676_s28, 3  ;;  %p195_p4 = scmp.ne.s32.totalorder %s834_s25, %s830_s24 }
   0x8   : > { %s924_s10 = scalar_select %p25_p1, %s838_s26, %s27_s8  }
   0x9   : > { %p36_p5 = por %p35_p2, %p34_p0  ;;  %p926_p6 = por %p190_p3, %p34_p0 }
   0xa   : > { %p196_p7 = scmp.eq.s32.totalorder %s677_s29, 3  ;;  %p679_p9 = scmp.ge.s32.totalorder %s842_s27, 4 }
   0xc   : > { %p930_p8 = por %p196_p7, %p195_p4  ;;  %230 = sbr.rel (%p679_p9) target bundleno = 26 (0x1a), region = 40 }
  0x13   : > { %233 = sbr.rel (!%p36_p5) target bundleno = 26 (0x1a), region = 44  ;;  %s235_s13 = sand.u32 (%p36_p5), 1, %s838_s26  }
  0x14   : > { %s681_s14 = sshll.u32 (%p36_p5), %s842_s27, 2  ;;  %s680_s15 = sshll.u32 (%p36_p5), %s235_s13, 3 }
  0x15   : > { %s239_s18 = scalar_lea.vmem (%p36_p5), %s1045_s0, %s681_s14  ;;  %s237_s19 = scalar_lea.vmem (%p36_p5), [#allocation2], %s680_s15 }
  0x16   : > { %v255_v0 = vld [vmem:[%s239_s18] sm:$0xf] (%p36_p5)  ;;  %v257_v1 = vld [vmem:[%s239_s18 + $0x10] sm:$0xf] (%p36_p5) }
  0x17   : > { %256 = vst [vmem:[%s237_s19] sm:$0xf] (%p36_p5), %v255_v0  ;;  %258 = vst [vmem:[%s237_s19 + $0x4] sm:$0xf] (%p36_p5), %v257_v1 }
  0x1a PF: > { %p682_p10 = scmp.ge.s32.totalorder %s842_s27, 1  ;;  %p284_p11 = scmp.lt.s32.totalorder %s842_s27, 5 }
  0x1c   : > { %p285_p12 = pnand %p682_p10, %p284_p11 }
  0x1d   : > { %s291_s20 = sand.u32 (!%p285_p12), 1, %s834_s25   ;;  %v776_v2 = vld [vmem:[%s1046_s1] sm:$0xff] (!%p285_p12)   ;;  %vm369_vm0 = vcmask (!%p285_p12), 130048   ;;  %v844_v5 = vmov (!%p285_p12), 0   ;;  %v331_v6 = vld [vmem:[%s1047_s2 + $0x10] sm:$0xff] (!%p285_p12)  ;;  %v777_v7 = vld [vmem:[%s1046_s1 + $0x8] sm:$0xff] (!%p285_p12)  }
  0x1e   : > { %288 = sbr.rel (%p285_p12) target bundleno = 724 (0x2d4), region = 85  ;;  %s948_s23 = sshll.u32 (!%p285_p12), %s291_s20, 3  ;;  %711 = vmatprep.mubr.msk.bf16.mxu0 (!%p285_p12), %vm369_vm0, %v776_v2  ;;  %v329_v3 = vld [vmem:[%s1047_s2] sm:$0xff] (!%p285_p12)  ;;  %773 = vset.pattern.permute.xlu0 (!%p285_p12), %v844_v5  ;;  %v330_v8 = vld [vmem:[%s1047_s2 + $0x8] sm:$0xff] (!%p285_p12)  ;;  %v332_v9 = vld [vmem:[%s1047_s2 + $0x18] sm:$0xff] (!%p285_p12)  ;;  %vm477_vm1 = vcmask (!%p285_p12), 261120  }
  0x1f   : > { %s293_s9 = scalar_lea.vmem (!%p285_p12), [#allocation2], %s948_s23  ;;  %774 = vset.pattern.permute.xlu1 (!%p285_p12), %v844_v5  ;;  %335 = vperm.xlu0 (!%p285_p12), %773, %v329_v3   ;;  %v443_v10 = vld [vmem:[%s1049_s4] sm:$0xff] (!%p285_p12)  ;;  %v444_v11 = vld [vmem:[%s1049_s4 + $0x8] sm:$0xff] (!%p285_p12)  ;;  %v445_v12 = vld [vmem:[%s1049_s4 + $0x10] sm:$0xff] (!%p285_p12)  ;;  %v845_v39 = vmov (!%p285_p12), 0.0   ;;  %vm846_vm6 = vmmov (!%p285_p12), 0  }
  0x20   : > { %v775_v4 = vld [vmem:[%s293_s9] sm:$0xff] (!%p285_p12)   ;;  %345 = vperm.xlu1 (!%p285_p12), %774, %v331_v6   ;;  %v446_v13 = vld [vmem:[%s1049_s4 + $0x18] sm:$0xff] (!%p285_p12)  ;;  %s696_s13 = sshll.u32 (!%p285_p12), %s676_s28, 7  ;;  %s321_s14 = scalar_lea.vmem (!%p285_p12), [#allocation3], %s948_s23 }
  0x21   : > { %709 = vmatprep.subr.bf16.mxu0 (!%p285_p12), %v775_v4  ;;  %v548_v14 = vld [vmem:[%s1051_s6] sm:$0xff] (!%p285_p12)  ;;  %v779_v38 = vld [vmem:[%s1048_s3 + $0x8] sm:$0xff] (!%p285_p12)   ;;  %s612_s15 = sshll.u32 (!%p285_p12), %s321_s14, 4  ;;  %s1001_s18 = scalar_lea.hbm (!%p285_p12), %s1052_s7, %s696_s13  ;;  %s1003_s15 = int_to_ptr.vmem [resolvable:$true] %s612_s15 }
  0x22   : > { %710 = vmatpush3.bf16.msra.mxu0 (!%p285_p12), %v775_v4  ;;  %v778_v15 = vld [vmem:[%s1048_s3] sm:$0xff] (!%p285_p12)   ;;  %s599_s28 = scalar_lea.sflag (!%p285_p12), [#allocation4], %s291_s20  ;;  %s780_s23 = scalar_lea.vmem (!%p285_p12), %s1003_s15, 128 }
  0x23   : > { %340 = vperm.xlu0 (!%p285_p12), %773, %v330_v8   ;;  %719 = vmatprep.mubr.msk.bf16.mxu1 (!%p285_p12), %vm477_vm1, %v778_v15  ;;  %v545_v62 = vld [vmem:[%s1050_s5] sm:$0xf] (!%p285_p12)  ;;  %p781_p13 = scmp.ne.s32.totalorder (!%p285_p12), %s1003_s15, %s780_s23  ;;  %s847_s19 = smov (!%p285_p12), [#allocation3]  }
  0x24   : > { %350 = vperm.xlu1 (!%p285_p12), %774, %v332_v9   ;;  %723 = vmatprep.subr.bf16.mxu0 (!%p285_p12), %v845_v39  ;;  %s784_s21 = sshll.u32 (!%p285_p12), %s847_s19, 4  ;;  %s785_s21 = int_to_ptr.vmem [resolvable:$false] %s784_s21 }
  0x25   : > { %712 = vmatmul.mubr.msk.bf16.vlgmr.msra.gmra.mrb[0].mxu0 %vm369_vm0, %v777_v7  ;;  %p782_p0 = pnand %p781_p13, %p926_p6  ;;  %s786_s22 = scalar_lea.vmem %s785_s21, 256 }
  0x26   : > { %727 = vmatprep.mubr.msk.bf16.mxu0 %vm846_vm6, %v845_v39  ;;  %p787_p2 = scmp.lt.s32.totalorder %s1003_s15, %s785_s21  ;;  %p788_p3 = scmp.lt.s32.totalorder %s786_s22, %s780_s23 }
  0x27   : > { %449 = vperm.xlu0 %773, %v443_v10   ;;  %p783_p1 = pneg %p782_p0 }
  0x28   : > { %454 = vperm.xlu1 %774, %v444_v11   ;;  %p789_p4 = por %p788_p3, %p787_p2 }
  0x2a   : > { %p790_p5 = pnand %p789_p4, %p783_p1 }
  0x2b   : > { %459 = vperm.xlu0 %773, %v445_v12  }
  0x2c   : > { %464 = vperm.xlu1 %774, %v446_v13  }
  0x2f   : > { %551 = vperm.xlu0 %773, %v548_v14  }
  0x9e   : > { %v336_v17 = vpop.permute.xlu0 %335 }
  0x9f   : > { %v346_v16 = vpop.permute.xlu1 %345 }
  0xa2   : > { %v341_v24 = vpop.permute.xlu0 %340 }
  0xa3   : > { %v351_v21 = vpop.permute.xlu1 %350 }
  0xa6   : > { %v450_v40 = vpop.permute.xlu0 %449 }
  0xa7   : > { %v455_v41 = vpop.permute.xlu1 %454 }
  0xaa   : > { %v460_v42 = vpop.permute.xlu0 %459 }
  0xab   : > { %v465_v46 = vpop.permute.xlu1 %464 }
  0xae   : > { %v552_v63 = vpop.permute.xlu0 %551 }
  0xf8   : > { %v713_v18 = vpop.f32.mrb[0].mxu0 }
  0xf9   : > { %v419_v19 = vadd.f32 %v713_v18, %v346_v16  ;;  %v410_v20 = vpop.f32.mrb[1].mxu0 }
  0xfa   : > { %v411_v22 = vadd.f32 %v410_v20, %v336_v17  ;;  %v714_v23 = vpop.f32.mrb[2].mxu0 }
  0xfb   : > { %v431_v25 = vmul.f32 0.01, %v419_v19  ;;  %v422_v26 = vadd.f32 %v714_v23, %v351_v21  ;;  %v413_v27 = vpop.f32.mrb[3].mxu0  ;;  %vm427_vm2 = vcmp.gt.f32.partialorder %v419_v19, 0.0 }
  0xfc   : > { %v429_v28 = vmul.f32 0.01, %v411_v22  ;;  %v414_v29 = vadd.f32 %v413_v27, %v341_v24  ;;  %vm425_vm4 = vcmp.gt.f32.partialorder %v411_v22, 0.0 }
  0xfd   : > { %vm428_vm3 = vcmp.gt.f32.partialorder %v422_v26, 0.0  ;;  %v432_v30 = vmul.f32 0.01, %v422_v26  ;;  %v435_v32 = vsel %vm427_vm2, %v419_v19, %v431_v25 }
  0xfe   : > { %v430_v31 = vmul.f32 0.01, %v414_v29  ;;  %vm426_vm5 = vcmp.gt.f32.partialorder %v414_v29, 0.0  ;;  %v433_v34 = vsel %vm425_vm4, %v411_v22, %v429_v28 }
  0xff   : > { %v436_v33 = vsel %vm428_vm3, %v422_v26, %v432_v30 }
 0x100   : > { %v434_v35 = vsel %vm426_vm5, %v414_v29, %v430_v31  ;;  %v442_v36 = vpack.c.bf16 %v436_v33, %v435_v32 }
 0x101   : > { %v441_v37 = vpack.c.bf16 %v434_v35, %v433_v34 }
 0x103   : > { %715 = vmatprep.subr.bf16.mxu1 %v441_v37 }
 0x104   : > { %716 = vmatpush3.bf16.msra.mxu1 %v441_v37 }
 0x105   : > { %717 = vmatprep.subr.bf16.mxu1 %v442_v36 }
 0x108   : > { %718 = vmatpush3.bf16.msra.mxu1 %v442_v36 }
 0x10b   : > { %720 = vmatmul.mubr.msk.bf16.vlgmr.msra.gmra.mrb[0].mxu1 %vm477_vm1, %v779_v38 }
 0x1de   : > { %v721_v43 = vpop.f32.mrb[0].mxu1 }
 0x1df   : > { %v527_v44 = vadd.f32 %v721_v43, %v460_v42  ;;  %v518_v45 = vpop.f32.mrb[1].mxu1 }
 0x1e0   : > { %v519_v47 = vadd.f32 %v518_v45, %v450_v40  ;;  %v722_v48 = vpop.f32.mrb[2].mxu1 }
 0x1e1   : > { %v539_v49 = vmul.f32 0.01, %v527_v44  ;;  %v530_v50 = vadd.f32 %v722_v48, %v465_v46  ;;  %v521_v51 = vpop.f32.mrb[3].mxu1  ;;  %vm535_vm7 = vcmp.gt.f32.partialorder %v527_v44, 0.0 }
 0x1e2   : > { %v537_v52 = vmul.f32 0.01, %v519_v47  ;;  %v522_v53 = vadd.f32 %v521_v51, %v455_v41  ;;  %vm533_vm8 = vcmp.gt.f32.partialorder %v519_v47, 0.0 }
 0x1e3   : > { %vm536_vm9 = vcmp.gt.f32.partialorder %v530_v50, 0.0  ;;  %v540_v54 = vmul.f32 0.01, %v530_v50  ;;  %v543_v56 = vsel %vm535_vm7, %v527_v44, %v539_v49 }
 0x1e4   : > { %vm534_vm10 = vcmp.gt.f32.partialorder %v522_v53, 0.0  ;;  %v538_v55 = vmul.f32 0.01, %v522_v53  ;;  %v541_v58 = vsel %vm533_vm8, %v519_v47, %v537_v52 }
 0x1e5   : > { %v544_v57 = vsel %vm536_vm9, %v530_v50, %v540_v54 }
 0x1e6   : > { %v547_v59 = vpack.c.bf16 %v544_v57, %v543_v56  ;;  %v542_v60 = vsel %vm534_vm10, %v522_v53, %v538_v55 }
 0x1e7   : > { %v546_v61 = vpack.c.bf16 %v542_v60, %v541_v58 }
 0x1e9   : > { %724 = vmatpush3.bf16.msra.mxu0 %v546_v61 }
 0x1ea   : > { %725 = vmatprep.subr.bf16.mxu0 %v845_v39 }
 0x1ed   : > { %726 = vmatpush3.bf16.msra.mxu0 %v547_v59 }
 0x1f0   : > { %728 = vmatmul.mubr.msk.bf16.vlgmr.msra.gmra.mrb[4].mxu0 %vm477_vm1, %v545_v62 }
 0x2c3   : > { %v591_v0 = vpop.f32.mrb[4].mxu0 }
 0x2c4   : > { %v592_v1 = vadd.f32 %v591_v0, %v552_v63  ;;  %v729_v2 = vpop.f32.mrb[5].mxu0 }
 0x2c5   : > { %v594_v3 = vpop.f32.mrb[6].mxu0 }
 0x2c6   : > { %597 = vst [vmem:[%s321_s14] sm:$0xff] %v592_v1  ;;  %v730_v4 = vpop.f32.mrb[7].mxu0 }
 0x2c7   : > { %793 = shalt.err (!%p790_p5)
}
 0x2c8   : > { %s794_s20 = scalar_lea.hbm %s1001_s18, 128  ;;  %s798_s9 = scalar_lea.hbm %s1052_s7, 512 }
 0x2c9   : > { %p795_p7 = scmp.ne.s32.totalorder %s1001_s18, %s794_s20  ;;  %p799_p11 = scmp.lt.u32.totalorder %s1001_s18, %s1052_s7 }
 0x2ca   : > { %p800_p12 = scmp.lt.u32.totalorder %s798_s9, %s794_s20  ;;  %p802_p0 = scmp.lt.u32.totalorder %s794_s20, %s1001_s18 }
 0x2cb   : > { %p796_p9 = pnand %p795_p7, %p926_p6 }
 0x2cc   : > { %p801_p13 = por %p800_p12, %p799_p11 }
 0x2cd   : > { %p797_p10 = pneg %p796_p9 }
 0x2ce   : > { %p803_p1 = por %p802_p0, %p801_p13 }
 0x2d0   : > { %p804_p2 = pnand %p803_p1, %p797_p10 }
 0x2d2   : > { %807 = shalt.err (!%p804_p2)
}
 0x2d3   : > { %731 = dma.vmem_to_hbm [thread:$0]  (%p926_p6), %s1003_s15, 128, %s1001_s18, %s599_s28  }
 0x2d4 PF: > { %p737_p3 = scmp.ge.s32.totalorder %s842_s27, 2  ;;  %s624_s16 = sand.u32 1, %s830_s24  }
 0x2d5   : > { %s625_s17 = scalar_lea.sflag [#allocation4], %s624_s16 }
 0x2d6   : > { %p734_p4 = pnand %p737_p3, %p930_p8 }
 0x2d8   : > { %825 = dma.done.wait (!%p734_p4), %s625_s17, 128  }
 0x2d9   : > { %827 = vsyncadd (!%p734_p4), %s625_s17, 4294967168  ;;  %p17_p5 = scmp.ge.s32.totalorder %s911_s30, 6   ;;  %s1055_s24 = smov %s834_s25 }
 0x2da   : > { %s1056_s25 = smov %s838_s26  ;;  %s1057_s26 = smov %s924_s10 }
 0x2db   : > { %s1058_s27 = smov %s911_s30  ;;  %19 = sbr.rel (!%p17_p5) target bundleno = 3 (0x3), region = 129 }
 0x2e2   :  { %630 = vsyncpa [#allocation4], 1 }
 0x2e3   :  { %632 = vsyncpa [#allocation4 + $0x1], 1 }

</bundles_post_ra>
